<compile_context>
chip_gen: v7x
topology: tpu7x:2x2x1
jax: 0.10.0
libtpu: 0.0.40
codegen_flags: <defaults>
</compile_context>

<pallas_src>
import functools

import jax
import jax.numpy as jnp
from jax.experimental import pallas as pl
from jax.experimental.pallas import tpu as pltpu

_LANES = 128
# (rows, 128) per input per pipeline buffer; multiple of 32 so (sublane, lane)
# tiling is legal for f32 / bf16 / int8.  4096 rows = 1-2 MiB per buffer, well
# under the scoped-VMEM defaults on v5e/v6e/v7x while still hitting the
# large-tile HBM-roofline regime.
_DEFAULT_MAX_TILE_ROWS = 4096


def _masked_scale_kernel(x_ref, m_ref, out_ref, acc_ref, cnt_ref, *, scale):
    """Accumulate sum(x*m) and sum(m) across the grid; finalize the scaled mean.

    x_ref   : VMEM (TR, 128) native dtype (e.g. bf16)  per-element loss tile
    m_ref   : VMEM (TR, 128) native dtype (e.g. int8)  validity-mask tile
    out_ref : SMEM (1,)      float32                   scaled masked mean
    acc_ref : VMEM (8, 128)  float32 scratch           running sum(x*m) partials
    cnt_ref : VMEM (8, 128)  float32 scratch           running sum(m)  partials
    scale   : python float baked at trace time (aux-task loss_factor)
    """
    step = pl.program_id(0)

    @pl.when(step == 0)
    def _init():
        acc_ref[...] = jnp.zeros_like(acc_ref)
        cnt_ref[...] = jnp.zeros_like(cnt_ref)

    # In-kernel VPU casts: inputs stay narrow (bf16 / int8) in HBM.
    x = x_ref[...].astype(jnp.float32)
    m = m_ref[...].astype(jnp.float32)
    tr = x.shape[0]
    # Pure VPU accumulate of (8,128) partial vregs; cross-lane reduce deferred.
    acc_ref[...] += jnp.sum((x * m).reshape(tr // 8, 8, _LANES), axis=0)
    cnt_ref[...] += jnp.sum(m.reshape(tr // 8, 8, _LANES), axis=0)

    @pl.when(step == pl.num_programs(0) - 1)
    def _finalize():
        total = jnp.sum(acc_ref[...])
        count = jnp.sum(cnt_ref[...])
        out_ref[0] = total / jnp.maximum(count, 1.0) * scale


def masked_sample_and_scale(x, mask, loss_factor, *, tile_rows=None):
    """sum(x*mask) / max(sum(mask), 1) * loss_factor  as a tiled Pallas reduction.

    Pass `x` / `mask` in their native dtypes (bf16 loss values, bool/int8 mask)
    to minimize HBM traffic; casting to f32 happens inside the kernel.
    """
    if mask.dtype == jnp.bool_:
        mask = mask.astype(jnp.int8)

    total = x.size
    x_flat = jnp.ravel(x)
    m_flat = jnp.ravel(mask)

    # Lane-dense layout: last dim = 128.
    rows = (total + _LANES - 1) // _LANES
    if tile_rows is None:
        tile_rows = min(_DEFAULT_MAX_TILE_ROWS, ((rows + 31) // 32) * 32)
    tile_rows = max(32, ((tile_rows + 31) // 32) * 32)
    padded_rows = ((rows + tile_rows - 1) // tile_rows) * tile_rows
    pad = padded_rows * _LANES - total
    if pad:
        # Mask padding is 0 -> padded elements contribute to neither sum nor count.
        x_flat = jnp.pad(x_flat, (0, pad))
        m_flat = jnp.pad(m_flat, (0, pad))
    x2 = x_flat.reshape(padded_rows, _LANES)
    m2 = m_flat.reshape(padded_rows, _LANES)

    kernel = functools.partial(_masked_scale_kernel, scale=float(loss_factor))
    out = pl.pallas_call(
        kernel,
        out_shape=jax.ShapeDtypeStruct((1,), jnp.float32),
        grid_spec=pltpu.PrefetchScalarGridSpec(
            num_scalar_prefetch=0,
            grid=(padded_rows // tile_rows,),
            in_specs=[
                pl.BlockSpec((tile_rows, _LANES), lambda i: (i, 0)),  # x tiles
                pl.BlockSpec((tile_rows, _LANES), lambda i: (i, 0)),  # mask tiles
            ],
            out_specs=pl.BlockSpec(memory_space=pltpu.MemorySpace.SMEM),
            scratch_shapes=[
                pltpu.VMEM((8, _LANES), jnp.float32),  # sum(x*m) partials
                pltpu.VMEM((8, _LANES), jnp.float32),  # sum(m)  partials
            ],
        ),
        compiler_params=pltpu.CompilerParams(
            # Resident accumulator / output across the grid -> reduction axis.
            dimension_semantics=("arbitrary",),
        ),
    )(x2, m2)
    return out[0]


class RolloutAuxTask:
    """Rollout-based self-supervised auxiliary task base class (JAX/Pallas port)."""

    def __init__(self, cfg, aux_cfg, task_cfg, device=None, **kwargs):
        self.cfg = cfg
        self.aux_cfg = aux_cfg
        self.task_cfg = task_cfg
        self.device = device
        # loss scaling factor used by every concrete subclass when reducing its loss
        self.loss_factor = float((aux_cfg or {}).get("loss_factor", 0.1))

    def forward(self, *x):
        # Matches the PyTorch base class exactly: forward is not implemented.
        raise NotImplementedError

    def __call__(self, *x):
        return self.forward(*x)

    # TODO(synk): `get_loss` is abstract in the reference module (implemented by
    # subclasses such as CPCA / InverseDynamics); only the shared masked
    # reduction hot path is provided here, in Pallas.
    def get_loss(self, observations, actions, vision, final_belief_state,
                 belief_features, n, t, env_zeros):
        raise NotImplementedError

    def masked_sample_and_scale(self, x, mask):
        # NOTE: normalization is by the valid-mask count (max(sum(mask), 1)),
        # matching the masked-mean reduction; subclasses that normalize by a
        # fixed n*t should divide by that constant instead.
        return masked_sample_and_scale(x, mask, self.loss_factor)


if __name__ == "__main__":
    key = jax.random.PRNGKey(0)
    k1, k2, k3, k4 = jax.random.split(key, 4)

    task = RolloutAuxTask(cfg={}, aux_cfg={"loss_factor": 0.1}, task_cfg={})

    # --- small single-tile case: time-major (T, N_feat) per-element loss ---
    T, NFEAT = 8, 32
    x = jax.random.normal(k1, (T, NFEAT), dtype=jnp.float32).astype(jnp.bfloat16)
    mask = (jax.random.uniform(k2, (T, NFEAT)) > 0.3).astype(jnp.int8)

    out = jax.block_until_ready(task.masked_sample_and_scale(x, mask))
    xf, mf = x.astype(jnp.float32), mask.astype(jnp.float32)
    ref = jnp.sum(xf * mf) / jnp.maximum(jnp.sum(mf), 1.0) * 0.1
    assert jnp.allclose(out, ref, atol=1e-4, rtol=1e-4), (out, ref)

    # --- multi-tile case: exercises the gridded accumulator path + padding ---
    T2, NFEAT2 = 64, 160  # 10240 elems -> 80 lane-rows -> 3 grid steps at tile_rows=32
    x2 = jax.random.normal(k3, (T2, NFEAT2), dtype=jnp.float32).astype(jnp.bfloat16)
    mask2 = (jax.random.uniform(k4, (T2, NFEAT2)) > 0.5).astype(jnp.int8)
    out2 = jax.block_until_ready(
        masked_sample_and_scale(x2, mask2, task.loss_factor, tile_rows=32))
    xf2, mf2 = x2.astype(jnp.float32), mask2.astype(jnp.float32)
    ref2 = jnp.sum(xf2 * mf2) / jnp.maximum(jnp.sum(mf2), 1.0) * 0.1
    assert jnp.allclose(out2, ref2, atol=1e-4, rtol=1e-3), (out2, ref2)

    # forward must raise NotImplementedError, as in the PyTorch base class
    try:
        task.forward(x)
        raise AssertionError("forward should raise NotImplementedError")
    except NotImplementedError:
        pass

    print("KERNEL_OK")
</pallas_src>

<mosaic_0001>
module attributes {stable_mosaic.version = 11 : i64} {
  func.func @_masked_scale_kernel(%arg0: i32, %arg1: memref<32x128xbf16, #tpu.memory_space<vmem>>, %arg2: memref<32x128xi8, #tpu.memory_space<vmem>>, %arg3: memref<1xf32, #tpu.memory_space<smem>>, %arg4: memref<8x128xf32, #tpu.memory_space<vmem>>, %arg5: memref<8x128xf32, #tpu.memory_space<vmem>>) attributes {dimension_semantics = [#tpu.dimension_semantics<arbitrary>], iteration_bounds = array<i64: 1>, scalar_prefetch = 0 : i64, scratch_operands = 2 : i64, tpu.core_type = #tpu.core_type<tc>, window_params = [{transform_indices = @transform_0, window_bounds = array<i64: 32, 128>}, {transform_indices = @transform_1, window_bounds = array<i64: 32, 128>}, {transform_indices = @transform_2, window_bounds = array<i64: 1>}]} {
    %c0_i32 = arith.constant 0 : i32
    %0 = arith.cmpi eq, %arg0, %c0_i32 : i32
    %1 = arith.extui %0 : i1 to i32
    %c0_i32_0 = arith.constant 0 : i32
    %2 = arith.cmpi ne, %1, %c0_i32_0 : i32
    scf.if %2 {
      %cst_15 = arith.constant 0.000000e+00 : f32
      %21 = vector.broadcast %cst_15 : f32 to vector<8x128xf32>
      %c0_16 = arith.constant 0 : index
      %c0_17 = arith.constant 0 : index
      %22 = vector.load %arg4[%c0_16, %c0_17] : memref<8x128xf32, #tpu.memory_space<vmem>>, vector<8x128xf32>
      tpu.vector_store %arg4[%c0_16, %c0_17], %21 {strides = array<i32>} : memref<8x128xf32, #tpu.memory_space<vmem>>, vector<8x128xf32>,
      %cst_18 = arith.constant 0.000000e+00 : f32
      %23 = vector.broadcast %cst_18 : f32 to vector<8x128xf32>
      %c0_19 = arith.constant 0 : index
      %c0_20 = arith.constant 0 : index
      %24 = vector.load %arg5[%c0_19, %c0_20] : memref<8x128xf32, #tpu.memory_space<vmem>>, vector<8x128xf32>
      tpu.vector_store %arg5[%c0_19, %c0_20], %23 {strides = array<i32>} : memref<8x128xf32, #tpu.memory_space<vmem>>, vector<8x128xf32>,
    } else {
    }
    %c0 = arith.constant 0 : index
    %c0_1 = arith.constant 0 : index
    %3 = vector.load %arg1[%c0, %c0_1] : memref<32x128xbf16, #tpu.memory_space<vmem>>, vector<32x128xbf16>
    %4 = arith.extf %3 : vector<32x128xbf16> to vector<32x128xf32>
    %c0_2 = arith.constant 0 : index
    %c0_3 = arith.constant 0 : index
    %5 = vector.load %arg2[%c0_2, %c0_3] : memref<32x128xi8, #tpu.memory_space<vmem>>, vector<32x128xi8>
    %6 = arith.sitofp %5 : vector<32x128xi8> to vector<32x128xf32>
    %c0_4 = arith.constant 0 : index
    %c0_5 = arith.constant 0 : index
    %7 = vector.load %arg4[%c0_4, %c0_5] : memref<8x128xf32, #tpu.memory_space<vmem>>, vector<8x128xf32>
    %8 = arith.mulf %4, %6 : vector<32x128xf32>
    %9 = vector.shape_cast %8 : vector<32x128xf32> to vector<4x8x128xf32>
    %cst = arith.constant dense<0.000000e+00> : vector<8x128xf32>
    %10 = vector.multi_reduction <add>, %9, %cst [0] : vector<4x8x128xf32> to vector<8x128xf32>
    %11 = arith.addf %7, %10 : vector<8x128xf32>
    %c0_6 = arith.constant 0 : index
    %c0_7 = arith.constant 0 : index
    %12 = vector.load %arg4[%c0_6, %c0_7] : memref<8x128xf32, #tpu.memory_space<vmem>>, vector<8x128xf32>
    tpu.vector_store %arg4[%c0_6, %c0_7], %11 {strides = array<i32>} : memref<8x128xf32, #tpu.memory_space<vmem>>, vector<8x128xf32>,
    %c0_8 = arith.constant 0 : index
    %c0_9 = arith.constant 0 : index
    %13 = vector.load %arg5[%c0_8, %c0_9] : memref<8x128xf32, #tpu.memory_space<vmem>>, vector<8x128xf32>
    %14 = vector.shape_cast %6 : vector<32x128xf32> to vector<4x8x128xf32>
    %cst_10 = arith.constant dense<0.000000e+00> : vector<8x128xf32>
    %15 = vector.multi_reduction <add>, %14, %cst_10 [0] : vector<4x8x128xf32> to vector<8x128xf32>
    %16 = arith.addf %13, %15 : vector<8x128xf32>
    %c0_11 = arith.constant 0 : index
    %c0_12 = arith.constant 0 : index
    %17 = vector.load %arg5[%c0_11, %c0_12] : memref<8x128xf32, #tpu.memory_space<vmem>>, vector<8x128xf32>
    tpu.vector_store %arg5[%c0_11, %c0_12], %16 {strides = array<i32>} : memref<8x128xf32, #tpu.memory_space<vmem>>, vector<8x128xf32>,
    %c0_i32_13 = arith.constant 0 : i32
    %18 = arith.cmpi eq, %arg0, %c0_i32_13 : i32
    %19 = arith.extui %18 : i1 to i32
    %c0_i32_14 = arith.constant 0 : i32
    %20 = arith.cmpi ne, %19, %c0_i32_14 : i32
    scf.if %20 {
      %c0_15 = arith.constant 0 : index
      %c0_16 = arith.constant 0 : index
      %21 = vector.load %arg4[%c0_15, %c0_16] : memref<8x128xf32, #tpu.memory_space<vmem>>, vector<8x128xf32>
      %22 = vector.shape_cast %21 : vector<8x128xf32> to vector<1x8x128xf32>
      %cst_17 = arith.constant dense<0.000000e+00> : vector<1xf32>
      %23 = vector.multi_reduction <add>, %22, %cst_17 [1, 2] : vector<1x8x128xf32> to vector<1xf32>
      %24 = vector.shape_cast %23 : vector<1xf32> to vector<1x1x1xf32>
      %25 = vector.extract %24[0, 0, 0] : f32 from vector<1x1x1xf32>
      %c0_18 = arith.constant 0 : index
      %c0_19 = arith.constant 0 : index
      %26 = vector.load %arg5[%c0_18, %c0_19] : memref<8x128xf32, #tpu.memory_space<vmem>>, vector<8x128xf32>
      %27 = vector.shape_cast %26 : vector<8x128xf32> to vector<1x8x128xf32>
      %cst_20 = arith.constant dense<0.000000e+00> : vector<1xf32>
      %28 = vector.multi_reduction <add>, %27, %cst_20 [1, 2] : vector<1x8x128xf32> to vector<1xf32>
      %29 = vector.shape_cast %28 : vector<1xf32> to vector<1x1x1xf32>
      %30 = vector.extract %29[0, 0, 0] : f32 from vector<1x1x1xf32>
      %cst_21 = arith.constant 1.000000e+00 : f32
      %31 = arith.maximumf %30, %cst_21 : f32
      %32 = arith.divf %25, %31 : f32
      %cst_22 = arith.constant 1.000000e-01 : f32
      %33 = arith.mulf %32, %cst_22 : f32
      %c0_23 = arith.constant 0 : index
      %34 = memref.load %arg3[%c0_23] : memref<1xf32, #tpu.memory_space<smem>>
      memref.store %33, %arg3[%c0_23] : memref<1xf32, #tpu.memory_space<smem>>
    } else {
    }
    return
  }
  func.func @transform_0(%arg0: i32) -> (i32, i32) {
    %c0_i32 = arith.constant 0 : i32
    %c0_i32_0 = arith.constant 0 : i32
    return %arg0, %c0_i32 : i32, i32
  }
  func.func @transform_1(%arg0: i32) -> (i32, i32) {
    %c0_i32 = arith.constant 0 : i32
    %c0_i32_0 = arith.constant 0 : i32
    return %arg0, %c0_i32 : i32, i32
  }
  func.func @transform_2(%arg0: i32) -> i32 {
    %c0_i32 = arith.constant 0 : i32
    %c0_i32_0 = arith.constant 0 : i32
    return %c0_i32 : i32
  }
}

</mosaic_0001>

<bundles_post_ra>
// kernel: tpu_custom_call.1
= control target key start
LH: loop header
LB: loop body
LE: loop exit
PB: predicated region body
PF: predicated region fallthrough
CT: control target
= control target key end

     0   :  { %7 = vsyncpa [#allocation5], 0  ;;  %s263_s0 = inlined_call_operand.hbm [shape: bf16[32,128], index: 0, kind: input, shape index: {}]   ;;  %s264_s1 = inlined_call_operand.hbm [shape: s8[32,128], index: 1, kind: input, shape index: {}]   ;;  %s265_s2 = inlined_call_operand.hbm [shape: f32[1], index: 2, kind: output, shape index: {}]  }
   0x1   :  { %8 = vsyncpa [#allocation8], 0 }
   0x2   :  { %9 = vsyncpa [#allocation6], 0  ;;  %s206_s9 = smov [#allocation4]   ;;  %s146_s13 = scalar_lea.hbm %s263_s0, 256 }
   0x3   :  { %s15_s10 = sshll.u32 %s206_s9, 4  ;;  %p147_p0 = scmp.ne.s32.totalorder %s263_s0, %s146_s13  ;;  %s16_s10 = int_to_ptr.vmem [resolvable:$true] %s15_s10 }
   0x4   :  { %p150_p1 = scmp.lt.u32.totalorder %s146_s13, %s263_s0 }
   0x6   :  { %p152_p2 = pnand %p150_p1, %p147_p0 }
   0x8   :  { %155 = shalt.err (!%p152_p2)
}
   0x9   :  { %s156_s18 = scalar_lea.vmem %s16_s10, 256  ;;  %p161_p4 = scmp.lt.s32.totalorder %s16_s10, %s16_s10 }
   0xa   :  { %p157_p3 = scmp.ne.s32.totalorder %s16_s10, %s156_s18  ;;  %p162_p5 = scmp.lt.s32.totalorder %s156_s18, %s156_s18 }
   0xc   :  { %p163_p6 = por %p162_p5, %p161_p4 }
   0xe   :  { %p164_p7 = pnand %p163_p6, %p157_p3 }
  0x10   :  { %167 = shalt.err (!%p164_p7)
}
  0x11   :  { %s207_s19 = smov 64   ;;  %s208_s20 = smov 4  }
  0x12   :  { %21 = dma.hbm_to_vmem [thread:$0]  %s263_s0, 256, %s16_s10, [#allocation5], %s207_s19, %s207_s19, %s208_s20  }
  0x13   :  { %s209_s23 = smov [#allocation7]   ;;  %s168_s27 = scalar_lea.hbm %s264_s1, 128 }
  0x14   :  { %s28_s24 = sshll.u32 %s209_s23, 4  ;;  %p169_p8 = scmp.ne.s32.totalorder %s264_s1, %s168_s27  ;;  %s29_s24 = int_to_ptr.vmem [resolvable:$true] %s28_s24 }
  0x15   :  { %p172_p9 = scmp.lt.u32.totalorder %s168_s27, %s264_s1 }
  0x17   :  { %p174_p10 = pnand %p172_p9, %p169_p8 }
  0x19   :  { %177 = shalt.err (!%p174_p10)
}
  0x1a   :  { %s178_s4 = scalar_lea.vmem %s29_s24, 128  ;;  %p183_p12 = scmp.lt.s32.totalorder %s29_s24, %s29_s24 }
  0x1b   :  { %p179_p11 = scmp.ne.s32.totalorder %s29_s24, %s178_s4  ;;  %p184_p13 = scmp.lt.s32.totalorder %s178_s4, %s178_s4 }
  0x1d   :  { %p185_p0 = por %p184_p13, %p183_p12 }
  0x1f   :  { %p186_p1 = pnand %p185_p0, %p179_p11 }
  0x21   :  { %189 = shalt.err (!%p186_p1)
}
  0x22   :  { %31 = dma.hbm_to_vmem [thread:$0]  %s264_s1, 128, %s29_s24, [#allocation8]  }
  0x23   :  { %200 = dma.done.wait [#allocation5], 256  }
  0x24   :  { %201 = vsyncadd [#allocation5], 4294967040 }
  0x25   :  { %202 = dma.done.wait [#allocation8], 128  }
  0x26   :  { %203 = vsyncadd [#allocation8], 4294967168  ;;  %v124_v0 = vld [vmem:[#allocation4] sm:$0xff]   ;;  %v131_v1 = vld [vmem:[#allocation4 + $0x8] sm:$0xff]   ;;  %s210_s7 = smov 1.0   ;;  %s190_s14 = scalar_lea.hbm %s265_s2, 16 }
  0x27   :  { %v52_v2 = vld [vmem:[#allocation7] sm:$0xff]  ;;  %v125_v3 = vunpack.c.l.bf16 %v124_v0  ;;  %v126_v4 = vunpack.c.h.bf16 %v124_v0  ;;  %v129_v5 = vunpack.c.l.bf16 %v131_v1  ;;  %v130_v10 = vunpack.c.h.bf16 %v131_v1  ;;  %p191_p2 = scmp.ne.s32.totalorder %s265_s2, %s190_s14  ;;  %p194_p3 = scmp.lt.u32.totalorder %s190_s14, %s265_s2 }
  0x28   :  { %v53_v6 = vunpack.c.0.s8 %v52_v2  ;;  %v54_v7 = vunpack.c.1.s8 %v52_v2  ;;  %v55_v8 = vunpack.c.2.s8 %v52_v2  ;;  %v56_v9 = vunpack.c.3.s8 %v52_v2 }
  0x29   :  { %p196_p4 = pnand %p194_p3, %p191_p2 }
  0x2a   :  { %v57_v11 = vcvt.s32.f32 %v53_v6  ;;  %v58_v12 = vcvt.s32.f32 %v54_v7  ;;  %v59_v13 = vcvt.s32.f32 %v55_v8  ;;  %v60_v14 = vcvt.s32.f32 %v56_v9 }
  0x2c   :  { %v62_v15 = vmul.f32 %v125_v3, %v57_v11  ;;  %v63_v16 = vmul.f32 %v126_v4, %v58_v12  ;;  %v64_v17 = vmul.f32 %v129_v5, %v59_v13  ;;  %v72_v18 = vadd.f32 %v58_v12, %v57_v11 }
  0x2d   :  { %v65_v19 = vmul.f32 %v130_v10, %v60_v14 }
  0x2e   :  { %v66_v20 = vadd.f32 %v63_v16, %v62_v15  ;;  %v73_v22 = vadd.f32 %v72_v18, %v59_v13 }
  0x30   :  { %v67_v21 = vadd.f32 %v66_v20, %v64_v17  ;;  %v74_v24 = vadd.f32 %v73_v22, %v60_v14 }
  0x32   :  { %v68_v23 = vadd.f32 %v67_v21, %v65_v19 }
  0x34   :  { %81 = vadd.xlane.f32.xlu0 %v68_v23 }
  0x38   :  { %91 = vadd.xlane.f32.xlu0 %v74_v24 }
  0xc1   :  { %v82_v25 = vpop.xlane.xlu0 %81 }
  0xc2   :  { %v83_v26 = vrot.slane %v82_v25, 4 }
  0xc4   :  { %v84_v27 = vadd.f32 %v83_v26, %v82_v25 }
  0xc5   :  { %v92_v28 = vpop.xlane.xlu0 %91 }
  0xc6   :  { %v85_v29 = vrot.slane %v84_v27, 2  ;;  %v93_v30 = vrot.slane %v92_v28, 4 }
  0xc8   :  { %v94_v31 = vadd.f32 %v93_v30, %v92_v28  ;;  %v86_v32 = vadd.f32 %v85_v29, %v84_v27 }
  0xca   :  { %v95_v33 = vrot.slane %v94_v31, 2  ;;  %v87_v34 = vrot.slane %v86_v32, 1 }
  0xcc   :  { %v96_v35 = vadd.f32 %v95_v33, %v94_v31  ;;  %v88_v36 = vadd.f32 %v87_v34, %v86_v32 }
  0xce   :  { %132 = vpush %v88_v36  ;;  %v97_v37 = vrot.slane %v96_v35, 1 }
  0xd0   :  { %v98_v38 = vadd.f32 %v97_v37, %v96_v35 }
  0xd2   :  { %134 = vpush %v98_v38 }
  0xff   :  { %s133_s1 = spop %132 }
 0x103   :  { %s135_s6 = spop %134 }
 0x104   :  { %s100_s8 = smax.f32 %s210_s7, %s135_s6 }
 0x105   :  { %v101_v39 = vstv %s100_s8 }
 0x106   :  { %144 = vrcp.f32 %v101_v39 }
 0x110   :  { %v145_v40 = vpop.eup %144 }
 0x111   :  { %136 = vpush %v145_v40 }
 0x142   :  { %s137_s9 = spop %136 }
 0x143   :  { %s104_s10 = smul.f32 %s137_s9, %s133_s1 }
 0x145   :  { %s105_s11 = smul.f32 0.1, %s104_s10 }
 0x147   :  { %107 = sst [smem:[#allocation9]] %s105_s11 }
 0x148   :  { %199 = shalt.err (!%p196_p4)
}
 0x149   :  { %s211_s19 = smov [#allocation9]  }
 0x14a   :  { %115 = dma.smem_to_hbm %s211_s19, 16, %s265_s2, [#allocation6]  }
 0x14b   :  { %204 = dma.done.wait [#allocation6], 16  }
 0x14c   :  { %205 = vsyncadd [#allocation6], 4294967280 }
 0x14d   :  { %119 = sfence }
 0x14e   :  { %120 = vsyncpa [#allocation5], 1 }
 0x14f   :  { %121 = vsyncpa [#allocation8], 1 }
 0x150   :  { %122 = vsyncpa [#allocation6], 1 }

</bundles_post_ra>
